<compile_context>
chip_gen: v5e
topology: v5e:2x2
jax: 0.10.0
libtpu: 0.0.40
codegen_flags: <defaults>
</compile_context>

<pallas_src>
import functools

import jax
import jax.numpy as jnp
from jax.experimental import pallas as pl
from jax.experimental.pallas import tpu as pltpu


def _round_up(x, m):
    return ((x + m - 1) // m) * m


def _cdiv(a, b):
    return (a + b - 1) // b


def _gated_conv_kernel(x_ref, w_ref, b_ref, o_ref, *, tap_offsets, p_blk, cout,
                       act, approx_sigmoid):
    # x_ref: (cin_p, p_blk + halo)    raw channel-padded input window (compute dtype)
    # w_ref: (2*cout, taps*cin_p)     packed [Wh ; Wg] weights (compute dtype)
    # b_ref: (2*cout, 1)              packed [bh ; bg] biases, f32
    # o_ref: (cout, p_blk)            gated output block (lane-dense, NCHW-major)

    # On-chip im2col: taps are constant flat shifts of the window, so the patch
    # matrix is just 9 static shifted slices stacked along the K (sublane) axis.
    patch = jnp.concatenate(
        [x_ref[:, off:off + p_blk] for off in tap_offsets], axis=0
    )  # (taps*cin_p, p_blk)

    # One fused MXU GEMM for both convolutions; f32 accumulation.
    hg = jnp.dot(w_ref[...], patch, preferred_element_type=jnp.float32)
    hg = hg + b_ref[...]                     # f32 bias broadcast over lanes

    h = hg[:cout, :]
    g = hg[cout:, :]
    if act is not None:
        h = act(h)
    if approx_sigmoid:
        gate = pl.reciprocal(1.0 + jnp.exp(-g), approx=True)   # EUP exp + EUP rcp
    else:
        gate = jax.nn.sigmoid(g)
    o_ref[...] = (h * gate).astype(o_ref.dtype)


def gated_conv2d(x, wh, bh, wg, bg, *, stride=1, padding=1, dilation=1,
                 activation=None, block_anchors=1024,
                 compute_dtype=jnp.bfloat16, approx_sigmoid=True):
    """x: (N, Cin, H, W) NCHW.  wh/wg: (Cout, Cin, KH, KW).  bh/bg: (Cout,)."""
    N, Cin, H, W = x.shape
    Cout, _, KH, KW = wh.shape

    taps = KH * KW
    cin_p = _round_up(Cin, 8)                       # sublane-pad channels
    Hp, Wp = H + 2 * padding, W + 2 * padding
    OH = (Hp - dilation * (KH - 1) - 1) // stride + 1
    OW = (Wp - dilation * (KW - 1) - 1) // stride + 1

    # Every padded pixel is an "anchor"; output (oh, ow) lives at anchor
    # oh*stride*Wp + ow*stride.  Taps are constant flat offsets from the anchor.
    A = Hp * Wp
    tap_offsets = tuple(kh * dilation * Wp + kw * dilation
                        for kh in range(KH) for kw in range(KW))
    max_off = tap_offsets[-1]
    halo = _round_up(max_off, 128) if max_off > 0 else 0

    # Adaptive anchor-block: >= ~4 grid steps at small sizes (both v7x TCs get
    # work, pipeline stays primed), capped at the requested size for large M.
    tgt_blocks = max(1, _cdiv(4, N))
    p_blk = max(128, min(_round_up(block_anchors, 128),
                         _round_up(_cdiv(A, tgt_blocks), 128)))
    nblk = _cdiv(A, p_blk)
    hwin = p_blk + halo
    Lfull = nblk * p_blk + halo

    # --- wrapper glue: pad + build per-block windows (no transposes) ---------
    xin = jnp.pad(x, ((0, 0), (0, cin_p - Cin),
                      (padding, padding), (padding, padding)))     # (N,cin_p,Hp,Wp)
    xflat = jnp.pad(xin.reshape(N, cin_p, A), ((0, 0), (0, 0), (0, Lfull - A)))
    # Overlapping (block + halo) windows; duplication is only halo/p_blk.
    xwin = jnp.stack([xflat[:, :, j * p_blk: j * p_blk + hwin]
                      for j in range(nblk)], axis=1)               # (N,nblk,cin_p,hwin)

    # Packed weights: rows [0:Cout] = h-conv, [Cout:2*Cout] = g-conv;
    # columns are (tap-major, channel-minor) to match the in-kernel patch.
    def _pack(w):                                   # (Cout,Cin,KH,KW)->(Cout,taps,cin_p)
        w = w.reshape(Cout, Cin, taps).transpose(0, 2, 1)
        return jnp.pad(w, ((0, 0), (0, 0), (0, cin_p - Cin)))
    wpk = jnp.concatenate([_pack(wh), _pack(wg)], axis=0).reshape(2 * Cout,
                                                                  taps * cin_p)
    bpk = jnp.concatenate([bh, bg]).reshape(2 * Cout, 1).astype(jnp.float32)

    if compute_dtype is not None:                    # bf16 operands on all gens
        xwin = xwin.astype(compute_dtype)
        wpk = wpk.astype(compute_dtype)

    kernel = functools.partial(_gated_conv_kernel, tap_offsets=tap_offsets,
                               p_blk=p_blk, cout=Cout, act=activation,
                               approx_sigmoid=approx_sigmoid)

    out = pl.pallas_call(
        kernel,
        out_shape=jax.ShapeDtypeStruct((N, Cout, nblk * p_blk), x.dtype),
        grid_spec=pltpu.PrefetchScalarGridSpec(
            num_scalar_prefetch=0,
            grid=(N, nblk),
            in_specs=[
                # streamed raw-input window (block + halo), lane-dense
                pl.BlockSpec((None, None, cin_p, hwin), lambda n, j: (n, j, 0, 0)),
                # resident packed weights / biases
                pl.BlockSpec((2 * Cout, taps * cin_p), lambda n, j: (0, 0)),
                pl.BlockSpec((2 * Cout, 1), lambda n, j: (0, 0)),
            ],
            out_specs=pl.BlockSpec((None, Cout, p_blk), lambda n, j: (n, 0, j)),
        ),
        compiler_params=pltpu.CompilerParams(
            dimension_semantics=("parallel", "parallel")),
    )(xwin, wpk, bpk)

    # Cheap epilogue: drop padded anchors, fold back to (Hp, Wp), take the
    # strided valid window.  Already channel-major -> no transpose.
    out = out[:, :, :A].reshape(N, Cout, Hp, Wp)
    out = out[:, :, 0:stride * (OH - 1) + 1:stride, 0:stride * (OW - 1) + 1:stride]
    return out


def _reference(x, wh, bh, wg, bg, stride, padding, dilation):
    dn = jax.lax.conv_dimension_numbers(x.shape, wh.shape, ("NCHW", "OIHW", "NCHW"))
    conv = lambda w, b: jax.lax.conv_general_dilated(
        x, w, window_strides=(stride, stride),
        padding=((padding, padding), (padding, padding)),
        rhs_dilation=(dilation, dilation), dimension_numbers=dn,
    ) + b.reshape(1, -1, 1, 1)
    return conv(wh, bh) * jax.nn.sigmoid(conv(wg, bg))


if __name__ == "__main__":
    # module config: GatedConv2d(input_channels=4, output_channels=8,
    #                            kernel_size=3, stride=1, padding=1)
    N, Cin, H, W = 2, 4, 16, 16
    Cout, KH, KW = 8, 3, 3
    stride, padding, dilation = 1, 1, 1

    key = jax.random.PRNGKey(0)
    kx, k1, k2, k3, k4 = jax.random.split(key, 5)
    x = jax.random.normal(kx, (N, Cin, H, W), dtype=jnp.float32)

    # deterministic PyTorch-style init: U(-1/sqrt(fan_in), 1/sqrt(fan_in))
    fan_in = Cin * KH * KW
    bound = 1.0 / (fan_in ** 0.5)
    wh = jax.random.uniform(k1, (Cout, Cin, KH, KW), jnp.float32, -bound, bound)
    bh = jax.random.uniform(k2, (Cout,), jnp.float32, -bound, bound)
    wg = jax.random.uniform(k3, (Cout, Cin, KH, KW), jnp.float32, -bound, bound)
    bg = jax.random.uniform(k4, (Cout,), jnp.float32, -bound, bound)

    ref = _reference(x, wh, bh, wg, bg, stride, padding, dilation)

    # exact path (f32 operands, exact sigmoid): tight check vs XLA conv.
    out = gated_conv2d(x, wh, bh, wg, bg,
                       stride=stride, padding=padding, dilation=dilation,
                       activation=None, compute_dtype=None, approx_sigmoid=False)
    out = jax.block_until_ready(out)
    assert out.shape == ref.shape == (N, Cout, H, W)
    assert jnp.allclose(out, ref, atol=2e-4, rtol=2e-4), "f32 mismatch vs reference"

    # default fast path (bf16 operands on all gens + approx-reciprocal sigmoid).
    out_fast = gated_conv2d(x, wh, bh, wg, bg,
                            stride=stride, padding=padding, dilation=dilation,
                            activation=None)
    out_fast = jax.block_until_ready(out_fast)
    assert jnp.allclose(out_fast, ref, atol=5e-2, rtol=5e-2), "bf16 mismatch"

    print("KERNEL_OK")
</pallas_src>

<mosaic_0001>
module attributes {stable_mosaic.version = 11 : i64} {
  func.func @_gated_conv_kernel(%arg0: i32, %arg1: i32, %arg2: memref<1x1x8x384xf32, #tpu.memory_space<vmem>>, %arg3: memref<16x72xf32, #tpu.memory_space<vmem>>, %arg4: memref<16x1xf32, #tpu.memory_space<vmem>>, %arg5: memref<1x8x256xf32, #tpu.memory_space<vmem>>) attributes {dimension_semantics = [#tpu.dimension_semantics<parallel>, #tpu.dimension_semantics<parallel>], iteration_bounds = array<i64: 2, 2>, scalar_prefetch = 0 : i64, scratch_operands = 0 : i64, tpu.core_type = #tpu.core_type<tc>, window_params = [{transform_indices = @transform_0, window_bounds = array<i64: 1, 1, 8, 384>}, {pipeline_mode = #tpu.pipeline_mode<synchronous>, transform_indices = @transform_1, window_bounds = array<i64: 16, 72>}, {pipeline_mode = #tpu.pipeline_mode<synchronous>, transform_indices = @transform_2, window_bounds = array<i64: 16, 1>}, {transform_indices = @transform_3, window_bounds = array<i64: 1, 8, 256>}]} {
    %c0 = arith.constant 0 : index
    %c0_0 = arith.constant 0 : index
    %c0_1 = arith.constant 0 : index
    %c0_2 = arith.constant 0 : index
    %0 = vector.load %arg2[%c0, %c0_0, %c0_1, %c0_2] : memref<1x1x8x384xf32, #tpu.memory_space<vmem>>, vector<1x1x8x256xf32>
    %1 = vector.shape_cast %0 : vector<1x1x8x256xf32> to vector<8x256xf32>
    %c0_3 = arith.constant 0 : index
    %c0_4 = arith.constant 0 : index
    %c0_5 = arith.constant 0 : index
    %c1 = arith.constant 1 : index
    %2 = vector.load %arg2[%c0_3, %c0_4, %c0_5, %c1] : memref<1x1x8x384xf32, #tpu.memory_space<vmem>>, vector<1x1x8x256xf32>
    %3 = vector.shape_cast %2 : vector<1x1x8x256xf32> to vector<8x256xf32>
    %c0_6 = arith.constant 0 : index
    %c0_7 = arith.constant 0 : index
    %c0_8 = arith.constant 0 : index
    %c2 = arith.constant 2 : index
    %4 = vector.load %arg2[%c0_6, %c0_7, %c0_8, %c2] : memref<1x1x8x384xf32, #tpu.memory_space<vmem>>, vector<1x1x8x256xf32>
    %5 = vector.shape_cast %4 : vector<1x1x8x256xf32> to vector<8x256xf32>
    %c0_9 = arith.constant 0 : index
    %c0_10 = arith.constant 0 : index
    %c0_11 = arith.constant 0 : index
    %c18 = arith.constant 18 : index
    %6 = vector.load %arg2[%c0_9, %c0_10, %c0_11, %c18] : memref<1x1x8x384xf32, #tpu.memory_space<vmem>>, vector<1x1x8x256xf32>
    %7 = vector.shape_cast %6 : vector<1x1x8x256xf32> to vector<8x256xf32>
    %c0_12 = arith.constant 0 : index
    %c0_13 = arith.constant 0 : index
    %c0_14 = arith.constant 0 : index
    %c19 = arith.constant 19 : index
    %8 = vector.load %arg2[%c0_12, %c0_13, %c0_14, %c19] : memref<1x1x8x384xf32, #tpu.memory_space<vmem>>, vector<1x1x8x256xf32>
    %9 = vector.shape_cast %8 : vector<1x1x8x256xf32> to vector<8x256xf32>
    %c0_15 = arith.constant 0 : index
    %c0_16 = arith.constant 0 : index
    %c0_17 = arith.constant 0 : index
    %c20 = arith.constant 20 : index
    %10 = vector.load %arg2[%c0_15, %c0_16, %c0_17, %c20] : memref<1x1x8x384xf32, #tpu.memory_space<vmem>>, vector<1x1x8x256xf32>
    %11 = vector.shape_cast %10 : vector<1x1x8x256xf32> to vector<8x256xf32>
    %c0_18 = arith.constant 0 : index
    %c0_19 = arith.constant 0 : index
    %c0_20 = arith.constant 0 : index
    %c36 = arith.constant 36 : index
    %12 = vector.load %arg2[%c0_18, %c0_19, %c0_20, %c36] : memref<1x1x8x384xf32, #tpu.memory_space<vmem>>, vector<1x1x8x256xf32>
    %13 = vector.shape_cast %12 : vector<1x1x8x256xf32> to vector<8x256xf32>
    %c0_21 = arith.constant 0 : index
    %c0_22 = arith.constant 0 : index
    %c0_23 = arith.constant 0 : index
    %c37 = arith.constant 37 : index
    %14 = vector.load %arg2[%c0_21, %c0_22, %c0_23, %c37] : memref<1x1x8x384xf32, #tpu.memory_space<vmem>>, vector<1x1x8x256xf32>
    %15 = vector.shape_cast %14 : vector<1x1x8x256xf32> to vector<8x256xf32>
    %c0_24 = arith.constant 0 : index
    %c0_25 = arith.constant 0 : index
    %c0_26 = arith.constant 0 : index
    %c38 = arith.constant 38 : index
    %16 = vector.load %arg2[%c0_24, %c0_25, %c0_26, %c38] : memref<1x1x8x384xf32, #tpu.memory_space<vmem>>, vector<1x1x8x256xf32>
    %17 = vector.shape_cast %16 : vector<1x1x8x256xf32> to vector<8x256xf32>
    %18 = tpu.concatenate %1, %3, %5, %7, %9, %11, %13, %15, %17 in 0 : vector<8x256xf32>, vector<8x256xf32>, vector<8x256xf32>, vector<8x256xf32>, vector<8x256xf32>, vector<8x256xf32>, vector<8x256xf32>, vector<8x256xf32>, vector<8x256xf32> -> vector<72x256xf32>
    %c0_27 = arith.constant 0 : index
    %c0_28 = arith.constant 0 : index
    %19 = vector.load %arg3[%c0_27, %c0_28] : memref<16x72xf32, #tpu.memory_space<vmem>>, vector<16x72xf32>
    %cst = arith.constant dense<0.000000e+00> : vector<16x256xf32>
    %20 = tpu.matmul %19, %18, %cst {dimension_numbers = #tpu.dot_dimension_numbers<[1], [0], [0], [1], [0, 0, 1, 1], [], []>} : vector<16x72xf32>, vector<72x256xf32>, vector<16x256xf32> -> vector<16x256xf32>
    %c0_29 = arith.constant 0 : index
    %c0_30 = arith.constant 0 : index
    %21 = vector.load %arg4[%c0_29, %c0_30] : memref<16x1xf32, #tpu.memory_space<vmem>>, vector<16x1xf32>
    %22 = vector.broadcast %21 : vector<16x1xf32> to vector<16x256xf32>
    %23 = arith.addf %20, %22 : vector<16x256xf32>
    %24 = vector.extract_strided_slice %23 {offsets = [0, 0], sizes = [8, 256], strides = [1, 1]} : vector<16x256xf32> to vector<8x256xf32>
    %25 = vector.extract_strided_slice %23 {offsets = [8, 0], sizes = [8, 256], strides = [1, 1]} : vector<16x256xf32> to vector<8x256xf32>
    %26 = arith.negf %25 : vector<8x256xf32>
    %27 = math.exp %26 : vector<8x256xf32>
    %cst_31 = arith.constant 1.000000e+00 : f32
    %28 = vector.broadcast %cst_31 : f32 to vector<8x256xf32>
    %29 = arith.addf %28, %27 : vector<8x256xf32>
    %30 = arith.divf %28, %29 : vector<8x256xf32>
    %31 = arith.mulf %24, %30 : vector<8x256xf32>
    %c0_32 = arith.constant 0 : index
    %c0_33 = arith.constant 0 : index
    %c0_34 = arith.constant 0 : index
    %32 = vector.load %arg5[%c0_32, %c0_33, %c0_34] : memref<1x8x256xf32, #tpu.memory_space<vmem>>, vector<1x8x256xf32>
    %33 = vector.shape_cast %32 : vector<1x8x256xf32> to vector<8x256xf32>
    %34 = vector.shape_cast %31 : vector<8x256xf32> to vector<1x8x256xf32>
    tpu.vector_store %arg5[%c0_32, %c0_33, %c0_34], %34 {strides = array<i32>} : memref<1x8x256xf32, #tpu.memory_space<vmem>>, vector<1x8x256xf32>,
    return
  }
  func.func @transform_0(%arg0: i32, %arg1: i32) -> (i32, i32, i32, i32) {
    %c0_i32 = arith.constant 0 : i32
    %c0_i32_0 = arith.constant 0 : i32
    %c0_i32_1 = arith.constant 0 : i32
    return %arg0, %arg1, %c0_i32, %c0_i32_0 : i32, i32, i32, i32
  }
  func.func @transform_1(%arg0: i32, %arg1: i32) -> (i32, i32) {
    %c0_i32 = arith.constant 0 : i32
    %c0_i32_0 = arith.constant 0 : i32
    %c0_i32_1 = arith.constant 0 : i32
    return %c0_i32, %c0_i32_0 : i32, i32
  }
  func.func @transform_2(%arg0: i32, %arg1: i32) -> (i32, i32) {
    %c0_i32 = arith.constant 0 : i32
    %c0_i32_0 = arith.constant 0 : i32
    %c0_i32_1 = arith.constant 0 : i32
    return %c0_i32, %c0_i32_0 : i32, i32
  }
  func.func @transform_3(%arg0: i32, %arg1: i32) -> (i32, i32, i32) {
    %c0_i32 = arith.constant 0 : i32
    %c0_i32_0 = arith.constant 0 : i32
    return %arg0, %c0_i32, %arg1 : i32, i32, i32
  }
}

</mosaic_0001>

<bundles_post_ra>
// kernel: tpu_custom_call.1
= control target key start
LH: loop header
LB: loop body
LE: loop exit
PB: predicated region body
PF: predicated region fallthrough
CT: control target
= control target key end

     0   :  { %8 = vsyncpa [#allocation3], 0  ;;  %s1038_s0 = inlined_call_operand.hbm [shape: f32[2,2,8,384], index: 0, kind: input, shape index: {}]   ;;  %s1039_s1 = inlined_call_operand.vmem [shape: f32[16,72], index: 1, kind: input, shape index: {}]   ;;  %s1040_s2 = inlined_call_operand.vmem [shape: f32[16,1], index: 2, kind: input, shape index: {}]   ;;  %s1041_s3 = inlined_call_operand.hbm [shape: f32[2,8,512], index: 3, kind: output, shape index: {}]  }
   0x1   :  { %10 = vsyncpa [#allocation3 + $0x1], 0 }
   0x2   :  { %11 = vsyncpa [#allocation4], 0 }
   0x3   :  { %13 = vsyncpa [#allocation4 + $0x1], 0  ;;  %s857_s12 = smov 0   ;;  %s859_s13 = smov 0  }
   0x4   :  { %s861_s14 = smov 0   ;;  %s863_s15 = smov 0  }
   0x5   :  { %s865_s16 = smov 0   ;;  %s867_s17 = smov 0  }
   0x6   :  { %s869_s18 = smov 0   ;;  %s871_s19 = smov 0  }
   0x7 LB: > { %s519_s20 = sadd.s32 4294967295, %s826_s19   ;;  %s520_s21 = sadd.s32 4294967294, %s826_s19   ;;  %s826_s19 = sphi %s871_s19, %s19_s19   ;;  %s822_s18 = sphi %s869_s18, %s1056_s18   ;;  %s818_s17 = sphi %s867_s17, %s1055_s17   ;;  %s814_s16 = sphi %s865_s16, %s1054_s16   ;;  %s810_s15 = sphi %s863_s15, %s1053_s15   ;;  %s806_s14 = sphi %s861_s14, %s1052_s14   ;;  %s802_s13 = sphi %s859_s13, %s1051_s13   ;;  %s798_s12 = sphi %s857_s12, %s1050_s12  }
   0x8   : > { %s28_s22 = sadd.s32 1, %s818_s17  ;;  %s31_s23 = sadd.s32 1, %s822_s18 }
   0x9   : > { %p29_p0 = scmp.ge.s32.totalorder %s28_s22, 2  ;;  %s40_s24 = sadd.s32 1, %s806_s14 }
   0xa   : > { %p47_p1 = scmp.ne.s32.totalorder %s806_s14, %s802_s13  ;;  %p48_p2 = scmp.eq.s32.totalorder %s826_s19, 0 }
   0xb   : > { %s1058_s22 = smov (%p29_p0, %s28_s22), 0  ;;  %s1060_s23 = smov (!%p29_p0, %s31_s23), %s822_s18 }
   0xc   : > { %s36_s25 = ssub.s32 %s818_s17, %s1058_s22  ;;  %p910_p3 = por %p48_p2, %p47_p1 }
   0xd   : > { %p33_p4 = scmp.ge.s32.totalorder %s1060_s23, 2  ;;  %p53_p5 = scmp.ne.s32.totalorder %s802_s13, %s798_s12 }
   0xe   : > { %p54_p6 = scmp.eq.s32.totalorder %s519_s20, 0  ;;  %p121_p7 = scmp.eq.s32.totalorder %s519_s20, 3 }
   0xf   : > { %s1062_s23 = smov (%p33_p4, %s1060_s23), 0  ;;  %p127_p10 = scmp.eq.s32.totalorder %s520_s21, 3 }
  0x10   : > { %1044 = sst [smem:[#allocation8_spill]] %s1062_s23  ;;  %p918_p8 = por %p54_p6, %p53_p5 }
  0x11   : > { %p922_p9 = por %p121_p7, %p47_p1  ;;  %s35_s29 = ssub.s32 %s822_s18, %s1062_s23 }
  0x12   : > { %s37_s30 = sor.u32 %s36_s25, %s35_s29  ;;  %p928_p12 = por %p127_p10, %p53_p5 }
  0x13   : > { %p38_p11 = scmp.eq.s32.totalorder %s37_s30, 0  ;;  %p572_p13 = scmp.lt.s32.totalorder %s826_s19, 4 }
  0x14   : > { %s153_s5 = sand.u32 1, %s806_s14   ;;  %s557_s8 = smul.u32 3, %s818_s17 }
  0x15   : > { %s935_s6 = scalar_select %p38_p11, %s806_s14, %s40_s24  }
  0x16   : > { %s556_s7 = smul.u32 24, %s153_s5  ;;  %p940_p0 = pnand %p572_p13, %p910_p3 }
  0x17   : > { %s558_s10 = smul.u32 6, %s822_s18  ;;  %p524_p1 = scmp.ge.s32.totalorder %s826_s19, 1 }
  0x18   : > { %s157_s11 = scalar_lea.vmem [#allocation2], %s556_s7  ;;  %p173_p2 = scmp.lt.s32.totalorder %s826_s19, 5 }
  0x19   : > { %s168_s20 = sshll.u32 %s157_s11, 4  ;;  %s162_s21 = sadd.s32 %s558_s10, %s557_s8  ;;  %s169_s20 = int_to_ptr.vmem [resolvable:$true] %s168_s20 }
  0x1a   : > { %s523_s25 = sshll.u32 %s162_s21, 3  ;;  %p174_p4 = pnand %p524_p1, %p173_p2 }
  0x1b   : > { %s164_s24 = scalar_lea.hbm %s1038_s0, %s523_s25  ;;  %s154_s26 = scalar_lea.sflag [#allocation3], %s153_s5 }
  0x1c   : > { %s166_s23 = sshll.u32 %s164_s24, 4  ;;  %177 = sbr.rel (%p174_p4) target bundleno = 364 (0x16c), region = 32  ;;  %s167_s23 = int_to_ptr.hbm [resolvable:$true] %s166_s23 }
  0x1d   : > { %567 = dma.hbm_to_vmem [thread:$0]  (!%p940_p0), %s167_s23, 384, %s169_s20, %s154_s26  }
  0x1e   : > { %s953_s7 = sand.u32 (!%p174_p4), 1, %s802_s13  }
  0x1f   : > { %s559_s8 = smul.u32 (!%p174_p4), 24, %s953_s7  ;;  %s180_s10 = scalar_lea.sflag (!%p174_p4), [#allocation3], %s953_s7 }
  0x21   : > { %s183_s11 = scalar_lea.vmem [#allocation2], %s559_s8 }
  0x22   : > { %789 = dma.done.wait (%p918_p8), %s180_s10, 384  }
  0x23   : > { %791 = vsyncadd (%p918_p8), %s180_s10, 4294966912  ;;  %v961_v0 = vld [vmem:[%s183_s11] sm:$0xff]  ;;  %v963_v1 = vld [vmem:[%s183_s11 + $0x8] sm:$0xff]  ;;  %s828_s23 = smov 91   ;;  %s829_s5 = smov 90   ;;  %vm299_vm0 = vcmask 736256  }
  0x24   : > { %v652_v2 = vpack.i.bf16 %v963_v1, %v961_v0  ;;  %s830_s9 = smov 92   ;;  %v212_v3 = vld [vmem:[%s183_s11 + $0x10] sm:$0xff]  ;;  %s831_s20 = smov 108   ;;  %vm288_vm1 = vcmask 744448   ;;  %vm277_vm2 = vcmask 752640   ;;  %v306_v24 = vld [vmem:[%s1040_s2] sm:$0xff] }
  0x25   : > { %s832_s27 = smov 109   ;;  %s833_s21 = smov 110   ;;  %v307_v23 = vld [vmem:[%s1040_s2 + $0x8] sm:$0xff]  ;;  %v836_v27 = vmov 0   ;;  %vm266_vm3 = vcmask 883712   ;;  %vm255_vm4 = vcmask 891904  }
  0x26   : > { %653 = vrot.lane.b32.xlu1 %v652_v2, %s828_s23  ;;  %648 = vrot.lane.b32.xlu0 %v652_v2, %s829_s5  ;;  %s834_s25 = smov 126   ;;  %s835_s29 = smov 127   ;;  %vm244_vm5 = vcmask 900096   ;;  %vm233_vm6 = vcmask 1031168   ;;  %vm222_vm7 = vcmask 1039360   ;;  %v305_v53 = vld [vmem:[%s1039_s1 + $0x8] sm:$0xff] }
  0x27   : > { %658 = vrot.lane.b32.xlu2 %v652_v2, %s830_s9  ;;  %687 = vset.pattern.permute.xlu1 %v836_v27  ;;  %vm318_vm8 = vcmask 588800   ;;  %v304_v54 = vld [vmem:[%s1039_s1] sm:$0xff]  ;;  %s414_s8 = scalar_lea.sflag [#allocation4], %s953_s7 }
  0x28   : > { %688 = vset.pattern.permute.xlu2 %v836_v27  ;;  %689 = vset.pattern.permute.xlu0 %v836_v27 }
  0x2e   : > { %286 = vrot.lane.b32.xlu1 %v212_v3, %s828_s23  ;;  %297 = vrot.lane.b32.xlu0 %v212_v3, %s829_s5 }
  0x2f   : > { %275 = vrot.lane.b32.xlu2 %v212_v3, %s830_s9  ;;  %s533_s9 = sshll.u32 %s810_s15, 1 }
  0x36   : > { %663 = vrot.lane.b32.xlu0 %v652_v2, %s831_s20  ;;  %264 = vrot.lane.b32.xlu1 %v212_v3, %s831_s20  ;;  %s534_s20 = sshll.u32 %s814_s16, 2 }
  0x37   : > { %668 = vrot.lane.b32.xlu2 %v652_v2, %s832_s27 }
  0x3e   : > { %253 = vrot.lane.b32.xlu0 %v212_v3, %s832_s27  ;;  %673 = vrot.lane.b32.xlu1 %v652_v2, %s833_s21  ;;  %s425_s27 = sadd.s32 %s534_s20, %s533_s9  ;;  %s748_s9 = scalar_lea.hbm %s1041_s3, 64 }
  0x3f   : > { %242 = vrot.lane.b32.xlu2 %v212_v3, %s833_s21  ;;  %s535_s21 = sshll.u32 %s425_s27, 3 }
  0x46   : > { %678 = vrot.lane.b32.xlu0 %v652_v2, %s834_s25  ;;  %231 = vrot.lane.b32.xlu1 %v212_v3, %s834_s25  ;;  %s525_s25 = sshll.u32 %s953_s7, 4 }
  0x47   : > { %683 = vrot.lane.b32.xlu2 %v652_v2, %s835_s29  ;;  %s206_s30 = scalar_lea.vmem [#allocation5], %s525_s25 }
  0x48   : > { %s429_s24 = sshll.u32 %s206_s30, 4  ;;  %s430_s24 = int_to_ptr.vmem [resolvable:$true] %s429_s24 }
  0x4e   : > { %220 = vrot.lane.b32.xlu0 %v212_v3, %s835_s29  ;;  %315 = vperm.xlu1 %687, %v307_v23   ;;  %s427_s29 = scalar_lea.hbm %s1041_s3, %s535_s21 }
  0x4f   : > { %310 = vperm.xlu2 %688, %v306_v24   ;;  %s431_s26 = sshll.u32 %s427_s29, 4  ;;  %s432_s26 = int_to_ptr.hbm [resolvable:$true] %s431_s26 }
  0x50   : > { %s742_s10 = sshra.s32 %s432_s26, 4  ;;  %s743_s10 = int_to_ptr.hbm [resolvable:$true] %s742_s10 }
  0x51   : > { %s744_s11 = scalar_lea.hbm %s743_s10, 16  ;;  %p749_p7 = scmp.lt.s32.totalorder %s743_s10, %s1041_s3 }
  0x52   : > { %p745_p3 = scmp.ne.s32.totalorder %s743_s10, %s744_s11  ;;  %p750_p8 = scmp.lt.s32.totalorder %s748_s9, %s744_s11 }
  0x54   : > { %p746_p5 = pnand %p745_p3, %p922_p9  ;;  %p751_p10 = por %p750_p8, %p749_p7 }
  0x56   : > { %p747_p6 = pneg %p746_p5 }
  0x58   : > { %p752_p11 = pnand %p751_p10, %p747_p6 }
  0x81   : > { %v659_v4 = vpop.permute.xlu2 %658 }
  0x82   : > { %v661_v6 = vunpack.i.h.bf16 %v659_v4  ;;  %v660_v7 = vunpack.i.l.bf16 %v659_v4 }
  0x84   : > { %v278_v16 = vsel %vm277_vm2, %v660_v7, %v661_v6 }
  0x89   : > { %v276_v5 = vpop.permute.xlu2 %275 }
  0x8a   : > { %v279_v22 = vsel %vm277_vm2, %v661_v6, %v276_v5 }
  0x91   : > { %v669_v17 = vpop.permute.xlu2 %668 }
  0x92   : > { %v671_v25 = vunpack.i.h.bf16 %v669_v17  ;;  %v670_v26 = vunpack.i.l.bf16 %v669_v17 }
  0x94   : > { %v256_v35 = vsel %vm255_vm4, %v670_v26, %v671_v25 }
  0x98   : > { %v654_v8 = vpop.permute.xlu1 %653  ;;  %v649_v9 = vpop.permute.xlu0 %648 }
  0x99   : > { %v656_v10 = vunpack.i.h.bf16 %v654_v8  ;;  %v655_v11 = vunpack.i.l.bf16 %v654_v8  ;;  %v651_v12 = vunpack.i.h.bf16 %v649_v9  ;;  %v650_v13 = vunpack.i.l.bf16 %v649_v9  ;;  %v243_v32 = vpop.permute.xlu2 %242 }
  0x9b   : > { %v300_v14 = vsel %vm299_vm0, %v650_v13, %v651_v12  ;;  %v289_v15 = vsel %vm288_vm1, %v655_v11, %v656_v10 }
  0x9c   : > { %332 = vmatpush.msra.mxu0 %v300_v14  ;;  %538 = vmatpush.msra.mxu2 %v300_v14 }
  0x9e   : > { %333 = vmatpush.msra.mxu0 %v289_v15  ;;  %539 = vmatpush.msra.mxu2 %v289_v15 }
  0xa0   : > { %v287_v18 = vpop.permute.xlu1 %286  ;;  %v298_v19 = vpop.permute.xlu0 %297  ;;  %334 = vmatpush.msra.mxu0 %v278_v16  ;;  %540 = vmatpush.msra.mxu2 %v278_v16 }
  0xa1   : > { %v301_v20 = vsel %vm299_vm0, %v651_v12, %v298_v19  ;;  %v290_v21 = vsel %vm288_vm1, %v656_v10, %v287_v18  ;;  %v684_v43 = vpop.permute.xlu2 %683 }
  0xa2   : > { %355 = vmatpush.msra.mxu1 %v301_v20  ;;  %547 = vmatpush.msra.mxu3 %v301_v20  ;;  %v686_v44 = vunpack.i.h.bf16 %v684_v43  ;;  %v685_v45 = vunpack.i.l.bf16 %v684_v43 }
  0xa4   : > { %356 = vmatpush.msra.mxu1 %v290_v21  ;;  %548 = vmatpush.msra.mxu3 %v290_v21  ;;  %v223_v52 = vsel %vm222_vm7, %v685_v45, %v686_v44 }
  0xa6   : > { %357 = vmatpush.msra.mxu1 %v279_v22  ;;  %549 = vmatpush.msra.mxu3 %v279_v22 }
  0xa8   : > { %v664_v28 = vpop.permute.xlu0 %663  ;;  %v265_v29 = vpop.permute.xlu1 %264 }
  0xa9   : > { %v666_v30 = vunpack.i.h.bf16 %v664_v28  ;;  %v665_v31 = vunpack.i.l.bf16 %v664_v28  ;;  %v311_v8 = vpop.permute.xlu2 %310 }
  0xab   : > { %v267_v33 = vsel %vm266_vm3, %v665_v31, %v666_v30  ;;  %v268_v34 = vsel %vm266_vm3, %v666_v30, %v265_v29 }
  0xac   : > { %335 = vmatpush.msra.mxu0 %v267_v33  ;;  %541 = vmatpush.msra.mxu2 %v267_v33 }
  0xad   : > { %358 = vmatpush.msra.mxu1 %v268_v34  ;;  %550 = vmatpush.msra.mxu3 %v268_v34 }
  0xae   : > { %336 = vmatpush.msra.mxu0 %v256_v35  ;;  %542 = vmatpush.msra.mxu2 %v256_v35 }
  0xb0   : > { %v254_v36 = vpop.permute.xlu0 %253  ;;  %v674_v37 = vpop.permute.xlu1 %673 }
  0xb1   : > { %v676_v38 = vunpack.i.h.bf16 %v674_v37  ;;  %v675_v39 = vunpack.i.l.bf16 %v674_v37  ;;  %v257_v40 = vsel %vm255_vm4, %v671_v25, %v254_v36 }
  0xb2   : > { %359 = vmatpush.msra.mxu1 %v257_v40  ;;  %551 = vmatpush.msra.mxu3 %v257_v40 }
  0xb3   : > { %v246_v41 = vsel %vm244_vm5, %v676_v38, %v243_v32  ;;  %v245_v42 = vsel %vm244_vm5, %v675_v39, %v676_v38 }
  0xb4   : > { %360 = vmatpush.msra.mxu1 %v246_v41  ;;  %552 = vmatpush.msra.mxu3 %v246_v41 }
  0xb5   : > { %337 = vmatpush.msra.mxu0 %v245_v42  ;;  %543 = vmatpush.msra.mxu2 %v245_v42 }
  0xb8   : > { %v679_v46 = vpop.permute.xlu0 %678  ;;  %v232_v47 = vpop.permute.xlu1 %231 }
  0xb9   : > { %v681_v48 = vunpack.i.h.bf16 %v679_v46  ;;  %v680_v49 = vunpack.i.l.bf16 %v679_v46 }
  0xbb   : > { %v234_v50 = vsel %vm233_vm6, %v680_v49, %v681_v48  ;;  %v235_v51 = vsel %vm233_vm6, %v681_v48, %v232_v47 }
  0xbc   : > { %338 = vmatpush.msra.mxu0 %v234_v50  ;;  %544 = vmatpush.msra.mxu2 %v234_v50 }
  0xbd   : > { %361 = vmatpush.msra.mxu1 %v235_v51  ;;  %553 = vmatpush.msra.mxu3 %v235_v51 }
  0xbe   : > { %545 = vmatpush.msra.mxu2 %v223_v52  ;;  %339 = vmatpush.msra.mxu0 %v223_v52 }
  0xc0   : > { %v221_v55 = vpop.permute.xlu0 %220  ;;  %546 = vmatpush.msra.mxu2 %v961_v0  ;;  %340 = vmatpush.msra.mxu0 %v961_v0  ;;  %v316_v57 = vpop.permute.xlu1 %315 }
  0xc1   : > { %527 = vmatmul.msk.f32.vlgmr.msra.gmra.mxu2 %vm318_vm8, %v305_v53  ;;  %v224_v56 = vsel %vm222_vm7, %v686_v44, %v221_v55  ;;  %526 = vmatmul.msk.f32.vlgmr.msra.gmra.mxu0 %vm318_vm8, %v304_v54 }
  0xc2   : > { %362 = vmatpush.msra.mxu1 %v224_v56  ;;  %554 = vmatpush.msra.mxu3 %v224_v56 }
  0xc4   : > { %555 = vmatpush.msra.mxu3 %v963_v1  ;;  %363 = vmatpush.msra.mxu1 %v963_v1 }
  0xc5   : > { %529 = vmatmul.msk.f32.vlgmr.msra.gmra.mxu3 %vm318_vm8, %v305_v53  ;;  %528 = vmatmul.msk.f32.vlgmr.msra.gmra.mxu1 %vm318_vm8, %v304_v54 }
 0x13e   : > { %v342_v9 = vpop.f32.mrf.mxu0 }
 0x13f   : > { %v343_v14 = vadd.f32 %v342_v9, %v311_v8 }
 0x142   : > { %v365_v18 = vpop.f32.mrf.mxu1 }
 0x143   : > { %v366_v25 = vadd.f32 %v365_v18, %v311_v8 }
 0x144   : > { %v345_v58 = vpop.f32.mrf.mxu2 }
 0x145   : > { %v346_v59 = vadd.f32 %v345_v58, %v316_v57 }
 0x147   : > { %v530_v60 = vmul.f32 -1.442695, %v346_v59 }
 0x148   : > { %v368_v61 = vpop.f32.mrf.mxu3 }
 0x149   : > { %690 = vpow2.f32 %v530_v60  ;;  %v369_v62 = vadd.f32 %v368_v61, %v316_v57 }
 0x14b   : > { %v531_v63 = vmul.f32 -1.442695, %v369_v62 }
 0x14d   : > { %692 = vpow2.f32 %v531_v63 }
 0x14f   : > { %v691_v0 = vpop.eup %690 }
 0x150   : > { %v377_v2 = vadd.f32 1.0, %v691_v0 }
 0x152   : > { %694 = vrcp.f32 %v377_v2  ;;  %v388_v10 = vand.u32 2147483647, %v377_v2  ;;  %v390_v11 = vand.u32 2147483648, %v377_v2  ;;  %vm384_vm10 = vweird.f32 %v377_v2 }
 0x153   : > { %v693_v3 = vpop.eup %692 }
 0x154   : > { %v378_v4 = vadd.f32 1.0, %v693_v3  ;;  %vm389_vm12 = vcmp.eq.f32.partialorder %v388_v10, 8.507059e+37  ;;  %v391_v17 = vor.u32 1.1754944e-38, %v390_v11 }
 0x156   : > { %696 = vrcp.f32 %v378_v4  ;;  %v405_v19 = vand.u32 2147483648, %v378_v4  ;;  %v403_v22 = vand.u32 2147483647, %v378_v4  ;;  %vm399_vm14 = vweird.f32 %v378_v4 }
 0x158   : > { %v695_v1 = vpop.eup %694  ;;  %v406_v27 = vor.u32 1.1754944e-38, %v405_v19  ;;  %vm404_vm0 = vcmp.eq.f32.partialorder %v403_v22, 8.507059e+37 }
 0x159   : > { %v380_v5 = vmul.f32 %v695_v1, %v377_v2  ;;  %vm385_vm9 = vweird.f32 %v695_v1 }
 0x15a   : > { %vm386_vm11 = vmor %vm384_vm10, %vm385_vm9 }
 0x15b   : > { %v381_v6 = vsub.f32 1.0, %v380_v5 }
 0x15c   : > { %v697_v7 = vpop.eup %696 }
 0x15d   : > { %v382_v12 = vmul.f32 %v695_v1, %v381_v6  ;;  %v395_v13 = vmul.f32 %v697_v7, %v378_v4  ;;  %vm400_vm13 = vweird.f32 %v697_v7 }
 0x15e   : > { %vm401_vm15 = vmor %vm399_vm14, %vm400_vm13 }
 0x15f   : > { %v383_v15 = vadd.f32 %v695_v1, %v382_v12  ;;  %v396_v16 = vsub.f32 1.0, %v395_v13 }
 0x161   : > { %v387_v20 = vsel %vm386_vm11, %v695_v1, %v383_v15  ;;  %v397_v21 = vmul.f32 %v697_v7, %v396_v16 }
 0x162   : > { %v392_v23 = vsel %vm389_vm12, %v391_v17, %v387_v20 }
 0x163   : > { %v409_v24 = vmul.f32 %v392_v23, %v343_v14  ;;  %v398_v26 = vadd.f32 %v697_v7, %v397_v21 }
 0x165   : > { %411 = vst [vmem:[%s206_s30] sm:$0xff] %v409_v24  ;;  %v402_v28 = vsel %vm401_vm15, %v697_v7, %v398_v26 }
 0x166   : > { %v407_v29 = vsel %vm404_vm0, %v406_v27, %v402_v28 }
 0x167   : > { %v410_v30 = vmul.f32 %v407_v29, %v366_v25 }
 0x169   : > { %412 = vst [vmem:[%s206_s30 + $0x8] sm:$0xff] %v410_v30 }
 0x16a   : > { %755 = shalt.err (!%p752_p11)
}
 0x16b   : > { %562 = dma.vmem_to_hbm [thread:$0]  (%p922_p9), %s430_s24, 256, %s432_s26, %s414_s8  }
 0x16c PF: > { %p573_p13 = scmp.ge.s32.totalorder %s826_s19, 2  ;;  %s443_s7 = sand.u32 1, %s798_s12  }
 0x16d   : > { %s444_s21 = scalar_lea.sflag [#allocation4], %s443_s7 }
 0x16e   : > { %p569_p0 = pnand %p573_p13, %p928_p12 }
 0x170   : > { %p570_p1 = pneg %p569_p0 }
 0x172   : > { %793 = dma.done.wait (%p570_p1), %s444_s21, 256  }
 0x173   : > { %795 = vsyncadd (%p570_p1), %s444_s21, 4294967040  ;;  %s19_s19 = sadd.s32 1, %s826_s19   ;;  %s1049_s28 = sld [smem:[#allocation8_spill]] }
 0x174   : > { %p16_p2 = scmp.ge.s32.totalorder %s19_s19, 6   ;;  %s1050_s12 = smov %s802_s13 }
 0x175   : > { %s1051_s13 = smov %s806_s14  ;;  %s1052_s14 = smov %s935_s6 }
 0x176   : > { %s1053_s15 = smov %s818_s17  ;;  %s1054_s16 = smov %s822_s18 }
 0x177   : > { %s1055_s17 = smov %s1058_s22  ;;  %18 = sbr.rel (!%p16_p2) target bundleno = 7 (0x7), region = 77 }
 0x179   : > { %s1056_s18 = smov %s1049_s28 }
 0x17c   :  { %450 = vsyncpa [#allocation3], 1 }
 0x17d   :  { %452 = vsyncpa [#allocation3 + $0x1], 1 }
 0x17e   :  { %453 = vsyncpa [#allocation4], 1 }
 0x17f   :  { %455 = vsyncpa [#allocation4 + $0x1], 1 }

</bundles_post_ra>
